<compile_context>
chip_gen: v7x
topology: tpu7x:2x2x1
jax: 0.10.0
libtpu: 0.0.40
codegen_flags: <defaults>
</compile_context>

<pallas_src>
import jax
import jax.numpy as jnp
from jax.experimental import pallas as pl
from jax.experimental.pallas import tpu as pltpu


def _mse_kernel(out_ref, tgt_ref, loss_ref):
    t = tgt_ref[...]
    o = out_ref[...]
    diff = jnp.where(t > 0.001, t - o, jnp.zeros_like(t))
    loss_ref[...] = diff * diff


def mse_loss(outputs, target):
    """Elementwise masked squared error, shape-preserving (matches MSEloss.forward)."""
    assert outputs.shape == target.shape
    orig_shape = outputs.shape
    dtype = outputs.dtype
    n = outputs.size

    # --- pick a wide, lane-dense slab layout ----------------------------------
    lanes = None
    for cand in (1024, 512, 256, 128):
        if n % cand == 0:
            lanes = cand
            break
    needs_pad = lanes is None
    if needs_pad:
        # Odd size: pad only the tail of the flat array up to one wide row.
        lanes = 1024
        padded_n = pl.cdiv(n, lanes) * lanes
    else:
        padded_n = n
    rows = padded_n // lanes

    # --- pick a row tile targeting ~1 MiB per operand tile --------------------
    itemsize = jnp.dtype(dtype).itemsize
    target_rows = max(8, (1 << 20) // (lanes * itemsize))
    target_rows = (target_rows // 8) * 8          # keep sublane multiple of 8

    if rows <= target_rows:
        row_tile = rows                           # full-extent block (always legal)
        grid = (1,)
    else:
        row_tile = target_rows
        grid = (pl.cdiv(rows, row_tile),)         # partial last block is fine (elementwise)

    def to_slab(x):
        x = x.reshape(-1)
        if needs_pad:
            x = jnp.pad(x, (0, padded_n - n))     # padded target==0 -> loss==0, inert
        return x.reshape(rows, lanes)

    o2 = to_slab(outputs)
    t2 = to_slab(target)

    spec = pl.BlockSpec((row_tile, lanes), lambda i: (i, 0))

    loss2 = pl.pallas_call(
        _mse_kernel,
        out_shape=jax.ShapeDtypeStruct((rows, lanes), dtype),
        grid_spec=pltpu.PrefetchScalarGridSpec(
            num_scalar_prefetch=0,
            grid=grid,
            in_specs=[spec, spec],
            out_specs=spec,
        ),
        compiler_params=pltpu.CompilerParams(
            dimension_semantics=("parallel",),
        ),
    )(o2, t2)

    if needs_pad:
        return loss2.reshape(-1)[:n].reshape(orig_shape)
    return loss2.reshape(orig_shape)


if __name__ == "__main__":
    key = jax.random.PRNGKey(0)
    k1, k2, k3, k4 = jax.random.split(key, 4)

    # Main test: NCHW, as the PyTorch module expects (divisible fast path).
    B, C, H, W = 2, 4, 16, 16
    outputs = jax.random.normal(k1, (B, C, H, W), dtype=jnp.float32)
    # target: mix of "valid" positive depths and invalid (<= 0.001) pixels
    target = jax.random.uniform(k2, (B, C, H, W), dtype=jnp.float32,
                                minval=-0.5, maxval=2.0)

    loss = mse_loss(outputs, target)
    loss = jax.block_until_ready(loss)

    val = (target > 0.001).astype(jnp.float32)
    ref = (target * val - outputs * val) ** 2
    assert loss.shape == (B, C, H, W)
    assert jnp.allclose(loss, ref, atol=1e-6, rtol=1e-6)

    # Secondary test: odd spatial size to exercise the tail-padding path.
    o_odd = jax.random.normal(k3, (1, 3, 15, 17), dtype=jnp.float32)
    t_odd = jax.random.uniform(k4, (1, 3, 15, 17), dtype=jnp.float32,
                               minval=-0.5, maxval=2.0)
    loss_odd = jax.block_until_ready(mse_loss(o_odd, t_odd))
    val_odd = (t_odd > 0.001).astype(jnp.float32)
    ref_odd = (t_odd * val_odd - o_odd * val_odd) ** 2
    assert loss_odd.shape == (1, 3, 15, 17)
    assert jnp.allclose(loss_odd, ref_odd, atol=1e-6, rtol=1e-6)

    print("KERNEL_OK")
</pallas_src>

<mosaic_0001>
module attributes {stable_mosaic.version = 11 : i64} {
  func.func @_mse_kernel(%arg0: i32, %arg1: memref<2x1024xf32, #tpu.memory_space<vmem>>, %arg2: memref<2x1024xf32, #tpu.memory_space<vmem>>, %arg3: memref<2x1024xf32, #tpu.memory_space<vmem>>) attributes {dimension_semantics = [#tpu.dimension_semantics<parallel>], iteration_bounds = array<i64: 1>, scalar_prefetch = 0 : i64, scratch_operands = 0 : i64, tpu.core_type = #tpu.core_type<tc>, window_params = [{transform_indices = @transform_0, window_bounds = array<i64: 2, 1024>}, {transform_indices = @transform_1, window_bounds = array<i64: 2, 1024>}, {transform_indices = @transform_2, window_bounds = array<i64: 2, 1024>}]} {
    %c0 = arith.constant 0 : index
    %c0_0 = arith.constant 0 : index
    %0 = vector.load %arg2[%c0, %c0_0] : memref<2x1024xf32, #tpu.memory_space<vmem>>, vector<2x1024xf32>
    %c0_1 = arith.constant 0 : index
    %c0_2 = arith.constant 0 : index
    %1 = vector.load %arg1[%c0_1, %c0_2] : memref<2x1024xf32, #tpu.memory_space<vmem>>, vector<2x1024xf32>
    %cst = arith.constant 1.000000e-03 : f32
    %2 = vector.broadcast %cst : f32 to vector<2x1024xf32>
    %3 = arith.cmpf ogt, %0, %2 : vector<2x1024xf32>
    %4 = arith.subf %0, %1 : vector<2x1024xf32>
    %cst_3 = arith.constant 0.000000e+00 : f32
    %5 = vector.broadcast %cst_3 : f32 to vector<2x1024xf32>
    %6 = arith.select %3, %4, %5 : vector<2x1024xi1>, vector<2x1024xf32>
    %7 = arith.mulf %6, %6 : vector<2x1024xf32>
    %c0_4 = arith.constant 0 : index
    %c0_5 = arith.constant 0 : index
    %8 = vector.load %arg3[%c0_4, %c0_5] : memref<2x1024xf32, #tpu.memory_space<vmem>>, vector<2x1024xf32>
    tpu.vector_store %arg3[%c0_4, %c0_5], %7 {strides = array<i32>} : memref<2x1024xf32, #tpu.memory_space<vmem>>, vector<2x1024xf32>,
    return
  }
  func.func @transform_0(%arg0: i32) -> (i32, i32) {
    %c0_i32 = arith.constant 0 : i32
    %c0_i32_0 = arith.constant 0 : i32
    return %arg0, %c0_i32 : i32, i32
  }
  func.func @transform_1(%arg0: i32) -> (i32, i32) {
    %c0_i32 = arith.constant 0 : i32
    %c0_i32_0 = arith.constant 0 : i32
    return %arg0, %c0_i32 : i32, i32
  }
  func.func @transform_2(%arg0: i32) -> (i32, i32) {
    %c0_i32 = arith.constant 0 : i32
    %c0_i32_0 = arith.constant 0 : i32
    return %arg0, %c0_i32 : i32, i32
  }
}

</mosaic_0001>

<bundles_post_ra>
// kernel: tpu_custom_call.1
= control target key start
LH: loop header
LB: loop body
LE: loop exit
PB: predicated region body
PF: predicated region fallthrough
CT: control target
= control target key end

     0   :  { %7 = vsyncpa [#allocation3], 0  ;;  %s195_s0 = inlined_call_operand.hbm [shape: f32[2,1024], index: 0, kind: input, shape index: {}]   ;;  %s196_s1 = inlined_call_operand.hbm [shape: f32[2,1024], index: 1, kind: input, shape index: {}]   ;;  %s197_s2 = inlined_call_operand.hbm [shape: f32[2,1024], index: 2, kind: output, shape index: {}]  }
   0x1   :  { %8 = vsyncpa [#allocation6], 0 }
   0x2   :  { %9 = vsyncpa [#allocation4], 0  ;;  %s141_s9 = smov [#allocation2]   ;;  %s142_s11 = smov [#allocation5]  }
   0x3   :  { %s16_s10 = sshll.u32 %s141_s9, 4  ;;  %s26_s12 = sshll.u32 %s142_s11, 4  ;;  %s17_s10 = int_to_ptr.vmem [resolvable:$true] %s16_s10  ;;  %s27_s12 = int_to_ptr.vmem [resolvable:$true] %s26_s12 }
   0x4   :  { %s69_s15 = scalar_lea.hbm %s195_s0, 256 }
   0x5   :  { %p70_p0 = scmp.ne.s32.totalorder %s195_s0, %s69_s15  ;;  %p73_p1 = scmp.lt.u32.totalorder %s69_s15, %s195_s0 }
   0x7   :  { %p75_p2 = pnand %p73_p1, %p70_p0 }
   0x9   :  { %78 = shalt.err (!%p75_p2)
}
   0xa   :  { %s79_s20 = scalar_lea.vmem %s17_s10, 256  ;;  %p84_p4 = scmp.lt.s32.totalorder %s17_s10, %s17_s10 }
   0xb   :  { %p80_p3 = scmp.ne.s32.totalorder %s17_s10, %s79_s20  ;;  %p85_p5 = scmp.lt.s32.totalorder %s79_s20, %s79_s20 }
   0xd   :  { %p86_p6 = por %p85_p5, %p84_p4 }
   0xf   :  { %p87_p7 = pnand %p86_p6, %p80_p3 }
  0x11   :  { %90 = shalt.err (!%p87_p7)
}
  0x12   :  { %19 = dma.hbm_to_vmem [thread:$0]  %s195_s0, 256, %s17_s10, [#allocation3]  }
  0x13   :  { %s91_s25 = scalar_lea.hbm %s196_s1, 256 }
  0x14   :  { %p92_p8 = scmp.ne.s32.totalorder %s196_s1, %s91_s25  ;;  %p95_p9 = scmp.lt.u32.totalorder %s91_s25, %s196_s1 }
  0x16   :  { %p97_p10 = pnand %p95_p9, %p92_p8 }
  0x18   :  { %100 = shalt.err (!%p97_p10)
}
  0x19   :  { %s101_s30 = scalar_lea.vmem %s27_s12, 256  ;;  %p106_p12 = scmp.lt.s32.totalorder %s27_s12, %s27_s12 }
  0x1a   :  { %p102_p11 = scmp.ne.s32.totalorder %s27_s12, %s101_s30  ;;  %p107_p13 = scmp.lt.s32.totalorder %s101_s30, %s101_s30 }
  0x1c   :  { %p108_p0 = por %p107_p13, %p106_p12 }
  0x1e   :  { %p109_p1 = pnand %p108_p0, %p102_p11 }
  0x20   :  { %112 = shalt.err (!%p109_p1)
}
  0x21   :  { %29 = dma.hbm_to_vmem [thread:$0]  %s196_s1, 256, %s27_s12, [#allocation6]  }
  0x22   :  { %135 = dma.done.wait [#allocation3], 256  }
  0x23   :  { %136 = vsyncadd [#allocation3], 4294967040 }
  0x24   :  { %137 = dma.done.wait [#allocation6], 256  }
  0x25   :  { %138 = vsyncadd [#allocation6], 4294967040  ;;  %v36_v0 = vld [vmem:[#allocation5] sm:$0xff]  ;;  %v38_v1 = vld [vmem:[#allocation2] sm:$0xff]  ;;  %s143_s4 = smov [#allocation7]  }
  0x26   :  { %v37_v2 = vld [vmem:[#allocation5 + $0x8] sm:$0xff]  ;;  %vm40_vm0 = vcmp.gt.f32.partialorder %v36_v0, 0.001  ;;  %v42_v3 = vsub.f32 %v36_v0, %v38_v1  ;;  %v39_v4 = vld [vmem:[#allocation2 + $0x8] sm:$0xff]  ;;  %s56_s5 = sshll.u32 %s143_s4, 4  ;;  %s57_s5 = int_to_ptr.vmem [resolvable:$true] %s56_s5 }
  0x27   :  { %vm41_vm1 = vcmp.gt.f32.partialorder %v37_v2, 0.001  ;;  %v43_v5 = vsub.f32 %v37_v2, %v39_v4  ;;  %s113_s1 = scalar_lea.vmem %s57_s5, 256  ;;  %p118_p3 = scmp.lt.s32.totalorder %s57_s5, %s57_s5 }
  0x28   :  { %v44_v6 = vsel %vm40_vm0, %v42_v3, 0.0  ;;  %p114_p2 = scmp.ne.s32.totalorder %s57_s5, %s113_s1  ;;  %p119_p4 = scmp.lt.s32.totalorder %s113_s1, %s113_s1 }
  0x29   :  { %v46_v7 = vmul.f32 %v44_v6, %v44_v6  ;;  %v45_v8 = vsel %vm41_vm1, %v43_v5, 0.0 }
  0x2a   :  { %v47_v9 = vmul.f32 %v45_v8, %v45_v8  ;;  %p120_p5 = por %p119_p4, %p118_p3 }
  0x2b   :  { %48 = vst [vmem:[#allocation7] sm:$0xff] %v46_v7 }
  0x2c   :  { %49 = vst [vmem:[#allocation7 + $0x8] sm:$0xff] %v47_v9  ;;  %p121_p6 = pnand %p120_p5, %p114_p2 }
  0x2e   :  { %124 = shalt.err (!%p121_p6)
}
  0x2f   :  { %s125_s8 = scalar_lea.hbm %s197_s2, 256 }
  0x30   :  { %p126_p7 = scmp.ne.s32.totalorder %s197_s2, %s125_s8  ;;  %p129_p8 = scmp.lt.u32.totalorder %s125_s8, %s197_s2 }
  0x32   :  { %p131_p9 = pnand %p129_p8, %p126_p7 }
  0x34   :  { %134 = shalt.err (!%p131_p9)
}
  0x35   :  { %59 = dma.vmem_to_hbm [thread:$0]  %s57_s5, 256, %s197_s2, [#allocation4]  }
  0x36   :  { %139 = dma.done.wait [#allocation4], 256  }
  0x37   :  { %140 = vsyncadd [#allocation4], 4294967040 }
  0x38   :  { %63 = vsyncpa [#allocation3], 1 }
  0x39   :  { %64 = vsyncpa [#allocation6], 1 }
  0x3a   :  { %65 = vsyncpa [#allocation4], 1 }

</bundles_post_ra>
